<compile_context>
chip_gen: v7x
topology: tpu7x:2x2x1
jax: 0.10.0
libtpu: 0.0.40
codegen_flags: <defaults>
</compile_context>

<pallas_src>
import jax
import jax.numpy as jnp
from jax.experimental import pallas as pl
from jax.experimental.pallas import tpu as pltpu


def _lstm_kernel(x_ref, w_ref, wo_ref, out_ref):
    """Single invocation: lengths + full LSTM recurrence + Linear + LogSoftmax."""
    B, T = x_ref.shape                 # (B, T)  -- input_size == 1 squeezed away
    Hp2, H4 = w_ref.shape              # (H+2, 4H)
    H = Hp2 - 2

    # ---- loop-invariant loads / static slices (free) -----------------------
    w_all = w_ref[...]
    whh = w_all[0:H, :]                # (H, 4H)   W_hh^T
    wih = w_all[H:H + 1, :]            # (1, 4H)   W_ih^T  (input_size == 1)
    bias = w_all[H + 1:H + 2, :]       # (1, 4H)   b_ih + b_hh

    wo_all = wo_ref[...]
    wo = wo_all[0:H, :]                # (H, O)
    bo = wo_all[H:H + 1, :]            # (1, O)

    x_all = x_ref[...]                 # (B, T)

    # torch.count_nonzero(input, dim=1).squeeze(1), computed in-kernel.
    # NOTE: inherited fragility -- a genuinely-valid 0.0 value or interior zero
    # would miscount the length (same behavior as the PyTorch model).
    lengths = jnp.sum((x_all != 0.0).astype(jnp.int32), axis=1, keepdims=True)  # (B,1)

    h = jnp.zeros((B, H), jnp.float32)
    c = jnp.zeros((B, H), jnp.float32)
    h_last = jnp.zeros((B, H), jnp.float32)   # == hn[-1] after the loop

    # T is a static Python int -> fully unrolled at trace time; all slices static.
    # (If T grows well past ~32, switch to lax.fori_loop to bound live ranges.)
    for t in range(T):
        x_t = x_all[:, t:t + 1]                                        # (B, 1)
        # input_size == 1 => input contribution is a broadcast mul-add (VPU),
        # recurrent term is one small MXU matmul. Gate layout: [i | f | g | o].
        gates = x_t * wih + bias + jnp.dot(h, whh,
                                           preferred_element_type=jnp.float32)  # (B,4H)

        sig = jax.nn.sigmoid(gates)            # one full-vreg EUP pass
        g_g = jnp.tanh(gates[:, 2 * H:3 * H])  # one EUP pass on the g slice
        i_g = sig[:, 0:H]
        f_g = sig[:, H:2 * H]
        o_g = sig[:, 3 * H:4 * H]

        c = f_g * c + i_g * g_g
        h = o_g * jnp.tanh(c)

        # Capture h at each sequence's last valid step (packed-sequence hn semantics).
        h_last = jnp.where(t == lengths - 1, h, h_last)

    # out1(hn[-1]) followed by LogSoftmax(dim=1)
    logits = jnp.dot(h_last, wo, preferred_element_type=jnp.float32) + bo   # (B, O)
    m = jnp.max(logits, axis=1, keepdims=True)
    lse = m + jnp.log(jnp.sum(jnp.exp(logits - m), axis=1, keepdims=True))
    out_ref[...] = logits - lse


def rnn_lstm_forward(x_btI, params):
    """x_btI: (B, T, input_size=1) float32 (PyTorch batch_first layout)."""
    B, T, I = x_btI.shape
    assert I == 1, "model requires input_size == 1 (count_nonzero(...).squeeze(1))"
    O = params["w_out"].shape[1]

    # Drop the trailing size-1 input dim: pure metadata reshape (bitcast), no copy.
    x2d = jnp.reshape(x_btI, (B, T))

    return pl.pallas_call(
        _lstm_kernel,
        out_shape=jax.ShapeDtypeStruct((B, O), jnp.float32),
        in_specs=[
            pl.BlockSpec(memory_space=pltpu.MemorySpace.VMEM),   # x      (B, T)
            pl.BlockSpec(memory_space=pltpu.MemorySpace.VMEM),   # w_main (H+2, 4H)
            pl.BlockSpec(memory_space=pltpu.MemorySpace.VMEM),   # w_out  (H+1, O)
        ],
        out_specs=pl.BlockSpec(memory_space=pltpu.MemorySpace.VMEM),
    )(x2d, params["w_main"], params["w_out"])


def rnn_lstm_reference(x_btI, params):
    """Pure-JAX reference (packed-sequence freeze semantics) for correctness check."""
    B, T, I = x_btI.shape
    w_main, w_out = params["w_main"], params["w_out"]
    H = w_main.shape[0] - 2
    whh, wih, bias = w_main[0:H], w_main[H:H + 1], w_main[H + 1:H + 2]
    wo, bo = w_out[0:H], w_out[H:H + 1]

    lengths = jnp.count_nonzero(x_btI, axis=1).astype(jnp.int32)   # (B, 1)
    x_tb = jnp.transpose(x_btI[..., 0], (1, 0))                    # (T, B)

    def step(carry, inp):
        h, c = carry
        x_t, t = inp
        gates = x_t[:, None] * wih + bias + h @ whh
        i_g = jax.nn.sigmoid(gates[:, 0:H])
        f_g = jax.nn.sigmoid(gates[:, H:2 * H])
        g_g = jnp.tanh(gates[:, 2 * H:3 * H])
        o_g = jax.nn.sigmoid(gates[:, 3 * H:4 * H])
        c_new = f_g * c + i_g * g_g
        h_new = o_g * jnp.tanh(c_new)
        valid = t < lengths
        return (jnp.where(valid, h_new, h), jnp.where(valid, c_new, c)), None

    h0 = jnp.zeros((B, H), jnp.float32)
    c0 = jnp.zeros((B, H), jnp.float32)
    (h, _), _ = jax.lax.scan(step, (h0, c0), (x_tb, jnp.arange(T, dtype=jnp.int32)))
    logits = h @ wo + bo
    return jax.nn.log_softmax(logits, axis=1)


def init_params(key, input_size, hidden_size, output_size):
    """PyTorch-style U(-1/sqrt(H), 1/sqrt(H)) init, packed into two slabs."""
    ks = jax.random.split(key, 6)
    k = 1.0 / jnp.sqrt(hidden_size)
    H4 = 4 * hidden_size
    w_ih = jax.random.uniform(ks[0], (H4, input_size), jnp.float32, -k, k)
    w_hh = jax.random.uniform(ks[1], (H4, hidden_size), jnp.float32, -k, k)
    b_ih = jax.random.uniform(ks[2], (H4,), jnp.float32, -k, k)
    b_hh = jax.random.uniform(ks[3], (H4,), jnp.float32, -k, k)
    w_o = jax.random.uniform(ks[4], (output_size, hidden_size), jnp.float32, -k, k)
    b_o = jax.random.uniform(ks[5], (output_size,), jnp.float32, -k, k)
    # Packed slabs (host-side, one-time):
    #   w_main rows: [0:H] = W_hh^T, [H] = W_ih^T (I==1), [H+1] = b_ih + b_hh
    #   w_out  rows: [0:H] = W_o^T,  [H] = b_o
    w_main = jnp.concatenate([w_hh.T, w_ih.T, (b_ih + b_hh)[None, :]], axis=0)
    w_out = jnp.concatenate([w_o.T, b_o[None, :]], axis=0)
    return {"w_main": w_main, "w_out": w_out}


if __name__ == "__main__":
    # Module config: input_size=1 (required by .squeeze(1) on the lengths),
    # hidden_size=32, output_size=8, num_layers=1, bidirectional=False, dropout=0.0
    B, T, INPUT_SIZE, HIDDEN, OUT = 4, 10, 1, 32, 8

    key = jax.random.PRNGKey(0)
    k_param, k_data = jax.random.split(key)
    params = init_params(k_param, INPUT_SIZE, HIDDEN, OUT)

    # Padded sequences: strictly-nonzero values for the first `len` steps, zeros after
    # (pack_padded_sequence / count_nonzero assume trailing-zero padding).
    lengths = jnp.array([10, 7, 5, 3], dtype=jnp.int32)
    vals = jax.random.uniform(k_data, (B, T, INPUT_SIZE), jnp.float32, 0.1, 1.0)
    time_idx = jnp.arange(T)[None, :, None]
    x = jnp.where(time_idx < lengths[:, None, None], vals, 0.0)    # (B, T, 1)

    out = jax.block_until_ready(rnn_lstm_forward(x, params))
    ref = jax.block_until_ready(rnn_lstm_reference(x, params))

    assert out.shape == (B, OUT)
    assert jnp.allclose(out, ref, atol=1e-5, rtol=1e-5), (out, ref)
    print("KERNEL_OK")
</pallas_src>

<mosaic_0001>
module attributes {stable_mosaic.version = 11 : i64} {
  func.func @_lstm_kernel(%arg0: memref<4x10xf32, #tpu.memory_space<vmem>>, %arg1: memref<34x128xf32, #tpu.memory_space<vmem>>, %arg2: memref<33x8xf32, #tpu.memory_space<vmem>>, %arg3: memref<4x8xf32, #tpu.memory_space<vmem>>) attributes {dimension_semantics = [], scalar_prefetch = 0 : i64, scratch_operands = 0 : i64, tpu.core_type = #tpu.core_type<tc>} {
    %c0 = arith.constant 0 : index
    %c0_0 = arith.constant 0 : index
    %0 = vector.load %arg1[%c0, %c0_0] : memref<34x128xf32, #tpu.memory_space<vmem>>, vector<34x128xf32>
    %1 = vector.extract_strided_slice %0 {offsets = [0, 0], sizes = [32, 128], strides = [1, 1]} : vector<34x128xf32> to vector<32x128xf32>
    %2 = vector.extract_strided_slice %0 {offsets = [32, 0], sizes = [1, 128], strides = [1, 1]} : vector<34x128xf32> to vector<1x128xf32>
    %3 = vector.extract_strided_slice %0 {offsets = [33, 0], sizes = [1, 128], strides = [1, 1]} : vector<34x128xf32> to vector<1x128xf32>
    %c0_1 = arith.constant 0 : index
    %c0_2 = arith.constant 0 : index
    %4 = vector.load %arg2[%c0_1, %c0_2] : memref<33x8xf32, #tpu.memory_space<vmem>>, vector<33x8xf32>
    %5 = vector.extract_strided_slice %4 {offsets = [0, 0], sizes = [32, 8], strides = [1, 1]} : vector<33x8xf32> to vector<32x8xf32>
    %6 = vector.extract_strided_slice %4 {offsets = [32, 0], sizes = [1, 8], strides = [1, 1]} : vector<33x8xf32> to vector<1x8xf32>
    %c0_3 = arith.constant 0 : index
    %c0_4 = arith.constant 0 : index
    %7 = vector.load %arg0[%c0_3, %c0_4] : memref<4x10xf32, #tpu.memory_space<vmem>>, vector<4x10xf32>
    %cst = arith.constant 0.000000e+00 : f32
    %8 = vector.broadcast %cst : f32 to vector<4x10xf32>
    %9 = arith.cmpf one, %7, %8 : vector<4x10xf32>
    %10 = arith.extui %9 : vector<4x10xi1> to vector<4x10xi32>
    %cst_5 = arith.constant dense<0> : vector<4xi32>
    %11 = vector.multi_reduction <add>, %10, %cst_5 [1] : vector<4x10xi32> to vector<4xi32>
    %12 = vector.shape_cast %11 : vector<4xi32> to vector<4x1xi32>
    %cst_6 = arith.constant 0.000000e+00 : f32
    %13 = vector.broadcast %cst_6 : f32 to vector<4x32xf32>
    %cst_7 = arith.constant 0.000000e+00 : f32
    %14 = vector.broadcast %cst_7 : f32 to vector<4x32xf32>
    %cst_8 = arith.constant 0.000000e+00 : f32
    %15 = vector.broadcast %cst_8 : f32 to vector<4x32xf32>
    %16 = vector.extract_strided_slice %7 {offsets = [0, 0], sizes = [4, 1], strides = [1, 1]} : vector<4x10xf32> to vector<4x1xf32>
    %17 = vector.broadcast %16 : vector<4x1xf32> to vector<4x128xf32>
    %18 = vector.broadcast %2 : vector<1x128xf32> to vector<4x128xf32>
    %19 = arith.mulf %17, %18 : vector<4x128xf32>
    %20 = vector.broadcast %3 : vector<1x128xf32> to vector<4x128xf32>
    %21 = arith.addf %19, %20 : vector<4x128xf32>
    %cst_9 = arith.constant dense<0.000000e+00> : vector<4x128xf32>
    %22 = tpu.matmul %13, %1, %cst_9 {dimension_numbers = #tpu.dot_dimension_numbers<[1], [0], [0], [1], [0, 0, 1, 1], [], []>} : vector<4x32xf32>, vector<32x128xf32>, vector<4x128xf32> -> vector<4x128xf32>
    %23 = arith.addf %21, %22 : vector<4x128xf32>
    %24 = arith.negf %23 : vector<4x128xf32>
    %25 = math.exp %24 : vector<4x128xf32>
    %cst_10 = arith.constant 1.000000e+00 : f32
    %26 = vector.broadcast %cst_10 : f32 to vector<4x128xf32>
    %27 = arith.addf %26, %25 : vector<4x128xf32>
    %28 = arith.divf %26, %27 : vector<4x128xf32>
    %29 = vector.extract_strided_slice %23 {offsets = [0, 64], sizes = [4, 32], strides = [1, 1]} : vector<4x128xf32> to vector<4x32xf32>
    %30 = math.tanh %29 : vector<4x32xf32>
    %31 = vector.extract_strided_slice %28 {offsets = [0, 0], sizes = [4, 32], strides = [1, 1]} : vector<4x128xf32> to vector<4x32xf32>
    %32 = vector.extract_strided_slice %28 {offsets = [0, 32], sizes = [4, 32], strides = [1, 1]} : vector<4x128xf32> to vector<4x32xf32>
    %33 = vector.extract_strided_slice %28 {offsets = [0, 96], sizes = [4, 32], strides = [1, 1]} : vector<4x128xf32> to vector<4x32xf32>
    %34 = arith.mulf %32, %14 : vector<4x32xf32>
    %35 = arith.mulf %31, %30 : vector<4x32xf32>
    %36 = arith.addf %34, %35 : vector<4x32xf32>
    %37 = math.tanh %36 : vector<4x32xf32>
    %38 = arith.mulf %33, %37 : vector<4x32xf32>
    %c1_i32 = arith.constant 1 : i32
    %39 = vector.broadcast %c1_i32 : i32 to vector<4x1xi32>
    %40 = arith.subi %12, %39 : vector<4x1xi32>
    %c0_i32 = arith.constant 0 : i32
    %41 = vector.broadcast %c0_i32 : i32 to vector<4x1xi32>
    %42 = arith.cmpi eq, %40, %41 : vector<4x1xi32>
    %43 = vector.shape_cast %42 : vector<4x1xi1> to vector<4x1xi1>
    %44 = vector.broadcast %43 : vector<4x1xi1> to vector<4x32xi1>
    %45 = arith.select %44, %38, %15 : vector<4x32xi1>, vector<4x32xf32>
    %46 = vector.extract_strided_slice %7 {offsets = [0, 1], sizes = [4, 1], strides = [1, 1]} : vector<4x10xf32> to vector<4x1xf32>
    %47 = vector.broadcast %46 : vector<4x1xf32> to vector<4x128xf32>
    %48 = vector.broadcast %2 : vector<1x128xf32> to vector<4x128xf32>
    %49 = arith.mulf %47, %48 : vector<4x128xf32>
    %50 = vector.broadcast %3 : vector<1x128xf32> to vector<4x128xf32>
    %51 = arith.addf %49, %50 : vector<4x128xf32>
    %cst_11 = arith.constant dense<0.000000e+00> : vector<4x128xf32>
    %52 = tpu.matmul %38, %1, %cst_11 {dimension_numbers = #tpu.dot_dimension_numbers<[1], [0], [0], [1], [0, 0, 1, 1], [], []>} : vector<4x32xf32>, vector<32x128xf32>, vector<4x128xf32> -> vector<4x128xf32>
    %53 = arith.addf %51, %52 : vector<4x128xf32>
    %54 = arith.negf %53 : vector<4x128xf32>
    %55 = math.exp %54 : vector<4x128xf32>
    %cst_12 = arith.constant 1.000000e+00 : f32
    %56 = vector.broadcast %cst_12 : f32 to vector<4x128xf32>
    %57 = arith.addf %56, %55 : vector<4x128xf32>
    %58 = arith.divf %56, %57 : vector<4x128xf32>
    %59 = vector.extract_strided_slice %53 {offsets = [0, 64], sizes = [4, 32], strides = [1, 1]} : vector<4x128xf32> to vector<4x32xf32>
    %60 = math.tanh %59 : vector<4x32xf32>
    %61 = vector.extract_strided_slice %58 {offsets = [0, 0], sizes = [4, 32], strides = [1, 1]} : vector<4x128xf32> to vector<4x32xf32>
    %62 = vector.extract_strided_slice %58 {offsets = [0, 32], sizes = [4, 32], strides = [1, 1]} : vector<4x128xf32> to vector<4x32xf32>
    %63 = vector.extract_strided_slice %58 {offsets = [0, 96], sizes = [4, 32], strides = [1, 1]} : vector<4x128xf32> to vector<4x32xf32>
    %64 = arith.mulf %62, %36 : vector<4x32xf32>
    %65 = arith.mulf %61, %60 : vector<4x32xf32>
    %66 = arith.addf %64, %65 : vector<4x32xf32>
    %67 = math.tanh %66 : vector<4x32xf32>
    %68 = arith.mulf %63, %67 : vector<4x32xf32>
    %c1_i32_13 = arith.constant 1 : i32
    %69 = vector.broadcast %c1_i32_13 : i32 to vector<4x1xi32>
    %70 = arith.subi %12, %69 : vector<4x1xi32>
    %c1_i32_14 = arith.constant 1 : i32
    %71 = vector.broadcast %c1_i32_14 : i32 to vector<4x1xi32>
    %72 = arith.cmpi eq, %70, %71 : vector<4x1xi32>
    %73 = vector.shape_cast %72 : vector<4x1xi1> to vector<4x1xi1>
    %74 = vector.broadcast %73 : vector<4x1xi1> to vector<4x32xi1>
    %75 = arith.select %74, %68, %45 : vector<4x32xi1>, vector<4x32xf32>
    %76 = vector.extract_strided_slice %7 {offsets = [0, 2], sizes = [4, 1], strides = [1, 1]} : vector<4x10xf32> to vector<4x1xf32>
    %77 = vector.broadcast %76 : vector<4x1xf32> to vector<4x128xf32>
    %78 = vector.broadcast %2 : vector<1x128xf32> to vector<4x128xf32>
    %79 = arith.mulf %77, %78 : vector<4x128xf32>
    %80 = vector.broadcast %3 : vector<1x128xf32> to vector<4x128xf32>
    %81 = arith.addf %79, %80 : vector<4x128xf32>
    %cst_15 = arith.constant dense<0.000000e+00> : vector<4x128xf32>
    %82 = tpu.matmul %68, %1, %cst_15 {dimension_numbers = #tpu.dot_dimension_numbers<[1], [0], [0], [1], [0, 0, 1, 1], [], []>} : vector<4x32xf32>, vector<32x128xf32>, vector<4x128xf32> -> vector<4x128xf32>
    %83 = arith.addf %81, %82 : vector<4x128xf32>
    %84 = arith.negf %83 : vector<4x128xf32>
    %85 = math.exp %84 : vector<4x128xf32>
    %cst_16 = arith.constant 1.000000e+00 : f32
    %86 = vector.broadcast %cst_16 : f32 to vector<4x128xf32>
    %87 = arith.addf %86, %85 : vector<4x128xf32>
    %88 = arith.divf %86, %87 : vector<4x128xf32>
    %89 = vector.extract_strided_slice %83 {offsets = [0, 64], sizes = [4, 32], strides = [1, 1]} : vector<4x128xf32> to vector<4x32xf32>
    %90 = math.tanh %89 : vector<4x32xf32>
    %91 = vector.extract_strided_slice %88 {offsets = [0, 0], sizes = [4, 32], strides = [1, 1]} : vector<4x128xf32> to vector<4x32xf32>
    %92 = vector.extract_strided_slice %88 {offsets = [0, 32], sizes = [4, 32], strides = [1, 1]} : vector<4x128xf32> to vector<4x32xf32>
    %93 = vector.extract_strided_slice %88 {offsets = [0, 96], sizes = [4, 32], strides = [1, 1]} : vector<4x128xf32> to vector<4x32xf32>
    %94 = arith.mulf %92, %66 : vector<4x32xf32>
    %95 = arith.mulf %91, %90 : vector<4x32xf32>
    %96 = arith.addf %94, %95 : vector<4x32xf32>
    %97 = math.tanh %96 : vector<4x32xf32>
    %98 = arith.mulf %93, %97 : vector<4x32xf32>
    %c1_i32_17 = arith.constant 1 : i32
    %99 = vector.broadcast %c1_i32_17 : i32 to vector<4x1xi32>
    %100 = arith.subi %12, %99 : vector<4x1xi32>
    %c2_i32 = arith.constant 2 : i32
    %101 = vector.broadcast %c2_i32 : i32 to vector<4x1xi32>
    %102 = arith.cmpi eq, %100, %101 : vector<4x1xi32>
    %103 = vector.shape_cast %102 : vector<4x1xi1> to vector<4x1xi1>
    %104 = vector.broadcast %103 : vector<4x1xi1> to vector<4x32xi1>
    %105 = arith.select %104, %98, %75 : vector<4x32xi1>, vector<4x32xf32>
    %106 = vector.extract_strided_slice %7 {offsets = [0, 3], sizes = [4, 1], strides = [1, 1]} : vector<4x10xf32> to vector<4x1xf32>
    %107 = vector.broadcast %106 : vector<4x1xf32> to vector<4x128xf32>
    %108 = vector.broadcast %2 : vector<1x128xf32> to vector<4x128xf32>
    %109 = arith.mulf %107, %108 : vector<4x128xf32>
    %110 = vector.broadcast %3 : vector<1x128xf32> to vector<4x128xf32>
    %111 = arith.addf %109, %110 : vector<4x128xf32>
    %cst_18 = arith.constant dense<0.000000e+00> : vector<4x128xf32>
    %112 = tpu.matmul %98, %1, %cst_18 {dimension_numbers = #tpu.dot_dimension_numbers<[1], [0], [0], [1], [0, 0, 1, 1], [], []>} : vector<4x32xf32>, vector<32x128xf32>, vector<4x128xf32> -> vector<4x128xf32>
    %113 = arith.addf %111, %112 : vector<4x128xf32>
    %114 = arith.negf %113 : vector<4x128xf32>
    %115 = math.exp %114 : vector<4x128xf32>
    %cst_19 = arith.constant 1.000000e+00 : f32
    %116 = vector.broadcast %cst_19 : f32 to vector<4x128xf32>
    %117 = arith.addf %116, %115 : vector<4x128xf32>
    %118 = arith.divf %116, %117 : vector<4x128xf32>
    %119 = vector.extract_strided_slice %113 {offsets = [0, 64], sizes = [4, 32], strides = [1, 1]} : vector<4x128xf32> to vector<4x32xf32>
    %120 = math.tanh %119 : vector<4x32xf32>
    %121 = vector.extract_strided_slice %118 {offsets = [0, 0], sizes = [4, 32], strides = [1, 1]} : vector<4x128xf32> to vector<4x32xf32>
    %122 = vector.extract_strided_slice %118 {offsets = [0, 32], sizes = [4, 32], strides = [1, 1]} : vector<4x128xf32> to vector<4x32xf32>
    %123 = vector.extract_strided_slice %118 {offsets = [0, 96], sizes = [4, 32], strides = [1, 1]} : vector<4x128xf32> to vector<4x32xf32>
    %124 = arith.mulf %122, %96 : vector<4x32xf32>
    %125 = arith.mulf %121, %120 : vector<4x32xf32>
    %126 = arith.addf %124, %125 : vector<4x32xf32>
    %127 = math.tanh %126 : vector<4x32xf32>
    %128 = arith.mulf %123, %127 : vector<4x32xf32>
    %c1_i32_20 = arith.constant 1 : i32
    %129 = vector.broadcast %c1_i32_20 : i32 to vector<4x1xi32>
    %130 = arith.subi %12, %129 : vector<4x1xi32>
    %c3_i32 = arith.constant 3 : i32
    %131 = vector.broadcast %c3_i32 : i32 to vector<4x1xi32>
    %132 = arith.cmpi eq, %130, %131 : vector<4x1xi32>
    %133 = vector.shape_cast %132 : vector<4x1xi1> to vector<4x1xi1>
    %134 = vector.broadcast %133 : vector<4x1xi1> to vector<4x32xi1>
    %135 = arith.select %134, %128, %105 : vector<4x32xi1>, vector<4x32xf32>
    %136 = vector.extract_strided_slice %7 {offsets = [0, 4], sizes = [4, 1], strides = [1, 1]} : vector<4x10xf32> to vector<4x1xf32>
    %137 = vector.broadcast %136 : vector<4x1xf32> to vector<4x128xf32>
    %138 = vector.broadcast %2 : vector<1x128xf32> to vector<4x128xf32>
    %139 = arith.mulf %137, %138 : vector<4x128xf32>
    %140 = vector.broadcast %3 : vector<1x128xf32> to vector<4x128xf32>
    %141 = arith.addf %139, %140 : vector<4x128xf32>
    %cst_21 = arith.constant dense<0.000000e+00> : vector<4x128xf32>
    %142 = tpu.matmul %128, %1, %cst_21 {dimension_numbers = #tpu.dot_dimension_numbers<[1], [0], [0], [1], [0, 0, 1, 1], [], []>} : vector<4x32xf32>, vector<32x128xf32>, vector<4x128xf32> -> vector<4x128xf32>
    %143 = arith.addf %141, %142 : vector<4x128xf32>
    %144 = arith.negf %143 : vector<4x128xf32>
    %145 = math.exp %144 : vector<4x128xf32>
    %cst_22 = arith.constant 1.000000e+00 : f32
    %146 = vector.broadcast %cst_22 : f32 to vector<4x128xf32>
    %147 = arith.addf %146, %145 : vector<4x128xf32>
    %148 = arith.divf %146, %147 : vector<4x128xf32>
    %149 = vector.extract_strided_slice %143 {offsets = [0, 64], sizes = [4, 32], strides = [1, 1]} : vector<4x128xf32> to vector<4x32xf32>
    %150 = math.tanh %149 : vector<4x32xf32>
    %151 = vector.extract_strided_slice %148 {offsets = [0, 0], sizes = [4, 32], strides = [1, 1]} : vector<4x128xf32> to vector<4x32xf32>
    %152 = vector.extract_strided_slice %148 {offsets = [0, 32], sizes = [4, 32], strides = [1, 1]} : vector<4x128xf32> to vector<4x32xf32>
    %153 = vector.extract_strided_slice %148 {offsets = [0, 96], sizes = [4, 32], strides = [1, 1]} : vector<4x128xf32> to vector<4x32xf32>
    %154 = arith.mulf %152, %126 : vector<4x32xf32>
    %155 = arith.mulf %151, %150 : vector<4x32xf32>
    %156 = arith.addf %154, %155 : vector<4x32xf32>
    %157 = math.tanh %156 : vector<4x32xf32>
    %158 = arith.mulf %153, %157 : vector<4x32xf32>
    %c1_i32_23 = arith.constant 1 : i32
    %159 = vector.broadcast %c1_i32_23 : i32 to vector<4x1xi32>
    %160 = arith.subi %12, %159 : vector<4x1xi32>
    %c4_i32 = arith.constant 4 : i32
    %161 = vector.broadcast %c4_i32 : i32 to vector<4x1xi32>
    %162 = arith.cmpi eq, %160, %161 : vector<4x1xi32>
    %163 = vector.shape_cast %162 : vector<4x1xi1> to vector<4x1xi1>
    %164 = vector.broadcast %163 : vector<4x1xi1> to vector<4x32xi1>
    %165 = arith.select %164, %158, %135 : vector<4x32xi1>, vector<4x32xf32>
    %166 = vector.extract_strided_slice %7 {offsets = [0, 5], sizes = [4, 1], strides = [1, 1]} : vector<4x10xf32> to vector<4x1xf32>
    %167 = vector.broadcast %166 : vector<4x1xf32> to vector<4x128xf32>
    %168 = vector.broadcast %2 : vector<1x128xf32> to vector<4x128xf32>
    %169 = arith.mulf %167, %168 : vector<4x128xf32>
    %170 = vector.broadcast %3 : vector<1x128xf32> to vector<4x128xf32>
    %171 = arith.addf %169, %170 : vector<4x128xf32>
    %cst_24 = arith.constant dense<0.000000e+00> : vector<4x128xf32>
    %172 = tpu.matmul %158, %1, %cst_24 {dimension_numbers = #tpu.dot_dimension_numbers<[1], [0], [0], [1], [0, 0, 1, 1], [], []>} : vector<4x32xf32>, vector<32x128xf32>, vector<4x128xf32> -> vector<4x128xf32>
    %173 = arith.addf %171, %172 : vector<4x128xf32>
    %174 = arith.negf %173 : vector<4x128xf32>
    %175 = math.exp %174 : vector<4x128xf32>
    %cst_25 = arith.constant 1.000000e+00 : f32
    %176 = vector.broadcast %cst_25 : f32 to vector<4x128xf32>
    %177 = arith.addf %176, %175 : vector<4x128xf32>
    %178 = arith.divf %176, %177 : vector<4x128xf32>
    %179 = vector.extract_strided_slice %173 {offsets = [0, 64], sizes = [4, 32], strides = [1, 1]} : vector<4x128xf32> to vector<4x32xf32>
    %180 = math.tanh %179 : vector<4x32xf32>
    %181 = vector.extract_strided_slice %178 {offsets = [0, 0], sizes = [4, 32], strides = [1, 1]} : vector<4x128xf32> to vector<4x32xf32>
    %182 = vector.extract_strided_slice %178 {offsets = [0, 32], sizes = [4, 32], strides = [1, 1]} : vector<4x128xf32> to vector<4x32xf32>
    %183 = vector.extract_strided_slice %178 {offsets = [0, 96], sizes = [4, 32], strides = [1, 1]} : vector<4x128xf32> to vector<4x32xf32>
    %184 = arith.mulf %182, %156 : vector<4x32xf32>
    %185 = arith.mulf %181, %180 : vector<4x32xf32>
    %186 = arith.addf %184, %185 : vector<4x32xf32>
    %187 = math.tanh %186 : vector<4x32xf32>
    %188 = arith.mulf %183, %187 : vector<4x32xf32>
    %c1_i32_26 = arith.constant 1 : i32
    %189 = vector.broadcast %c1_i32_26 : i32 to vector<4x1xi32>
    %190 = arith.subi %12, %189 : vector<4x1xi32>
    %c5_i32 = arith.constant 5 : i32
    %191 = vector.broadcast %c5_i32 : i32 to vector<4x1xi32>
    %192 = arith.cmpi eq, %190, %191 : vector<4x1xi32>
    %193 = vector.shape_cast %192 : vector<4x1xi1> to vector<4x1xi1>
    %194 = vector.broadcast %193 : vector<4x1xi1> to vector<4x32xi1>
    %195 = arith.select %194, %188, %165 : vector<4x32xi1>, vector<4x32xf32>
    %196 = vector.extract_strided_slice %7 {offsets = [0, 6], sizes = [4, 1], strides = [1, 1]} : vector<4x10xf32> to vector<4x1xf32>
    %197 = vector.broadcast %196 : vector<4x1xf32> to vector<4x128xf32>
    %198 = vector.broadcast %2 : vector<1x128xf32> to vector<4x128xf32>
    %199 = arith.mulf %197, %198 : vector<4x128xf32>
    %200 = vector.broadcast %3 : vector<1x128xf32> to vector<4x128xf32>
    %201 = arith.addf %199, %200 : vector<4x128xf32>
    %cst_27 = arith.constant dense<0.000000e+00> : vector<4x128xf32>
    %202 = tpu.matmul %188, %1, %cst_27 {dimension_numbers = #tpu.dot_dimension_numbers<[1], [0], [0], [1], [0, 0, 1, 1], [], []>} : vector<4x32xf32>, vector<32x128xf32>, vector<4x128xf32> -> vector<4x128xf32>
    %203 = arith.addf %201, %202 : vector<4x128xf32>
    %204 = arith.negf %203 : vector<4x128xf32>
    %205 = math.exp %204 : vector<4x128xf32>
    %cst_28 = arith.constant 1.000000e+00 : f32
    %206 = vector.broadcast %cst_28 : f32 to vector<4x128xf32>
    %207 = arith.addf %206, %205 : vector<4x128xf32>
    %208 = arith.divf %206, %207 : vector<4x128xf32>
    %209 = vector.extract_strided_slice %203 {offsets = [0, 64], sizes = [4, 32], strides = [1, 1]} : vector<4x128xf32> to vector<4x32xf32>
    %210 = math.tanh %209 : vector<4x32xf32>
    %211 = vector.extract_strided_slice %208 {offsets = [0, 0], sizes = [4, 32], strides = [1, 1]} : vector<4x128xf32> to vector<4x32xf32>
    %212 = vector.extract_strided_slice %208 {offsets = [0, 32], sizes = [4, 32], strides = [1, 1]} : vector<4x128xf32> to vector<4x32xf32>
    %213 = vector.extract_strided_slice %208 {offsets = [0, 96], sizes = [4, 32], strides = [1, 1]} : vector<4x128xf32> to vector<4x32xf32>
    %214 = arith.mulf %212, %186 : vector<4x32xf32>
    %215 = arith.mulf %211, %210 : vector<4x32xf32>
    %216 = arith.addf %214, %215 : vector<4x32xf32>
    %217 = math.tanh %216 : vector<4x32xf32>
    %218 = arith.mulf %213, %217 : vector<4x32xf32>
    %c1_i32_29 = arith.constant 1 : i32
    %219 = vector.broadcast %c1_i32_29 : i32 to vector<4x1xi32>
    %220 = arith.subi %12, %219 : vector<4x1xi32>
    %c6_i32 = arith.constant 6 : i32
    %221 = vector.broadcast %c6_i32 : i32 to vector<4x1xi32>
    %222 = arith.cmpi eq, %220, %221 : vector<4x1xi32>
    %223 = vector.shape_cast %222 : vector<4x1xi1> to vector<4x1xi1>
    %224 = vector.broadcast %223 : vector<4x1xi1> to vector<4x32xi1>
    %225 = arith.select %224, %218, %195 : vector<4x32xi1>, vector<4x32xf32>
    %226 = vector.extract_strided_slice %7 {offsets = [0, 7], sizes = [4, 1], strides = [1, 1]} : vector<4x10xf32> to vector<4x1xf32>
    %227 = vector.broadcast %226 : vector<4x1xf32> to vector<4x128xf32>
    %228 = vector.broadcast %2 : vector<1x128xf32> to vector<4x128xf32>
    %229 = arith.mulf %227, %228 : vector<4x128xf32>
    %230 = vector.broadcast %3 : vector<1x128xf32> to vector<4x128xf32>
    %231 = arith.addf %229, %230 : vector<4x128xf32>
    %cst_30 = arith.constant dense<0.000000e+00> : vector<4x128xf32>
    %232 = tpu.matmul %218, %1, %cst_30 {dimension_numbers = #tpu.dot_dimension_numbers<[1], [0], [0], [1], [0, 0, 1, 1], [], []>} : vector<4x32xf32>, vector<32x128xf32>, vector<4x128xf32> -> vector<4x128xf32>
    %233 = arith.addf %231, %232 : vector<4x128xf32>
    %234 = arith.negf %233 : vector<4x128xf32>
    %235 = math.exp %234 : vector<4x128xf32>
    %cst_31 = arith.constant 1.000000e+00 : f32
    %236 = vector.broadcast %cst_31 : f32 to vector<4x128xf32>
    %237 = arith.addf %236, %235 : vector<4x128xf32>
    %238 = arith.divf %236, %237 : vector<4x128xf32>
    %239 = vector.extract_strided_slice %233 {offsets = [0, 64], sizes = [4, 32], strides = [1, 1]} : vector<4x128xf32> to vector<4x32xf32>
    %240 = math.tanh %239 : vector<4x32xf32>
    %241 = vector.extract_strided_slice %238 {offsets = [0, 0], sizes = [4, 32], strides = [1, 1]} : vector<4x128xf32> to vector<4x32xf32>
    %242 = vector.extract_strided_slice %238 {offsets = [0, 32], sizes = [4, 32], strides = [1, 1]} : vector<4x128xf32> to vector<4x32xf32>
    %243 = vector.extract_strided_slice %238 {offsets = [0, 96], sizes = [4, 32], strides = [1, 1]} : vector<4x128xf32> to vector<4x32xf32>
    %244 = arith.mulf %242, %216 : vector<4x32xf32>
    %245 = arith.mulf %241, %240 : vector<4x32xf32>
    %246 = arith.addf %244, %245 : vector<4x32xf32>
    %247 = math.tanh %246 : vector<4x32xf32>
    %248 = arith.mulf %243, %247 : vector<4x32xf32>
    %c1_i32_32 = arith.constant 1 : i32
    %249 = vector.broadcast %c1_i32_32 : i32 to vector<4x1xi32>
    %250 = arith.subi %12, %249 : vector<4x1xi32>
    %c7_i32 = arith.constant 7 : i32
    %251 = vector.broadcast %c7_i32 : i32 to vector<4x1xi32>
    %252 = arith.cmpi eq, %250, %251 : vector<4x1xi32>
    %253 = vector.shape_cast %252 : vector<4x1xi1> to vector<4x1xi1>
    %254 = vector.broadcast %253 : vector<4x1xi1> to vector<4x32xi1>
    %255 = arith.select %254, %248, %225 : vector<4x32xi1>, vector<4x32xf32>
    %256 = vector.extract_strided_slice %7 {offsets = [0, 8], sizes = [4, 1], strides = [1, 1]} : vector<4x10xf32> to vector<4x1xf32>
    %257 = vector.broadcast %256 : vector<4x1xf32> to vector<4x128xf32>
    %258 = vector.broadcast %2 : vector<1x128xf32> to vector<4x128xf32>
    %259 = arith.mulf %257, %258 : vector<4x128xf32>
    %260 = vector.broadcast %3 : vector<1x128xf32> to vector<4x128xf32>
    %261 = arith.addf %259, %260 : vector<4x128xf32>
    %cst_33 = arith.constant dense<0.000000e+00> : vector<4x128xf32>
    %262 = tpu.matmul %248, %1, %cst_33 {dimension_numbers = #tpu.dot_dimension_numbers<[1], [0], [0], [1], [0, 0, 1, 1], [], []>} : vector<4x32xf32>, vector<32x128xf32>, vector<4x128xf32> -> vector<4x128xf32>
    %263 = arith.addf %261, %262 : vector<4x128xf32>
    %264 = arith.negf %263 : vector<4x128xf32>
    %265 = math.exp %264 : vector<4x128xf32>
    %cst_34 = arith.constant 1.000000e+00 : f32
    %266 = vector.broadcast %cst_34 : f32 to vector<4x128xf32>
    %267 = arith.addf %266, %265 : vector<4x128xf32>
    %268 = arith.divf %266, %267 : vector<4x128xf32>
    %269 = vector.extract_strided_slice %263 {offsets = [0, 64], sizes = [4, 32], strides = [1, 1]} : vector<4x128xf32> to vector<4x32xf32>
    %270 = math.tanh %269 : vector<4x32xf32>
    %271 = vector.extract_strided_slice %268 {offsets = [0, 0], sizes = [4, 32], strides = [1, 1]} : vector<4x128xf32> to vector<4x32xf32>
    %272 = vector.extract_strided_slice %268 {offsets = [0, 32], sizes = [4, 32], strides = [1, 1]} : vector<4x128xf32> to vector<4x32xf32>
    %273 = vector.extract_strided_slice %268 {offsets = [0, 96], sizes = [4, 32], strides = [1, 1]} : vector<4x128xf32> to vector<4x32xf32>
    %274 = arith.mulf %272, %246 : vector<4x32xf32>
    %275 = arith.mulf %271, %270 : vector<4x32xf32>
    %276 = arith.addf %274, %275 : vector<4x32xf32>
    %277 = math.tanh %276 : vector<4x32xf32>
    %278 = arith.mulf %273, %277 : vector<4x32xf32>
    %c1_i32_35 = arith.constant 1 : i32
    %279 = vector.broadcast %c1_i32_35 : i32 to vector<4x1xi32>
    %280 = arith.subi %12, %279 : vector<4x1xi32>
    %c8_i32 = arith.constant 8 : i32
    %281 = vector.broadcast %c8_i32 : i32 to vector<4x1xi32>
    %282 = arith.cmpi eq, %280, %281 : vector<4x1xi32>
    %283 = vector.shape_cast %282 : vector<4x1xi1> to vector<4x1xi1>
    %284 = vector.broadcast %283 : vector<4x1xi1> to vector<4x32xi1>
    %285 = arith.select %284, %278, %255 : vector<4x32xi1>, vector<4x32xf32>
    %286 = vector.extract_strided_slice %7 {offsets = [0, 9], sizes = [4, 1], strides = [1, 1]} : vector<4x10xf32> to vector<4x1xf32>
    %287 = vector.broadcast %286 : vector<4x1xf32> to vector<4x128xf32>
    %288 = vector.broadcast %2 : vector<1x128xf32> to vector<4x128xf32>
    %289 = arith.mulf %287, %288 : vector<4x128xf32>
    %290 = vector.broadcast %3 : vector<1x128xf32> to vector<4x128xf32>
    %291 = arith.addf %289, %290 : vector<4x128xf32>
    %cst_36 = arith.constant dense<0.000000e+00> : vector<4x128xf32>
    %292 = tpu.matmul %278, %1, %cst_36 {dimension_numbers = #tpu.dot_dimension_numbers<[1], [0], [0], [1], [0, 0, 1, 1], [], []>} : vector<4x32xf32>, vector<32x128xf32>, vector<4x128xf32> -> vector<4x128xf32>
    %293 = arith.addf %291, %292 : vector<4x128xf32>
    %294 = arith.negf %293 : vector<4x128xf32>
    %295 = math.exp %294 : vector<4x128xf32>
    %cst_37 = arith.constant 1.000000e+00 : f32
    %296 = vector.broadcast %cst_37 : f32 to vector<4x128xf32>
    %297 = arith.addf %296, %295 : vector<4x128xf32>
    %298 = arith.divf %296, %297 : vector<4x128xf32>
    %299 = vector.extract_strided_slice %293 {offsets = [0, 64], sizes = [4, 32], strides = [1, 1]} : vector<4x128xf32> to vector<4x32xf32>
    %300 = math.tanh %299 : vector<4x32xf32>
    %301 = vector.extract_strided_slice %298 {offsets = [0, 0], sizes = [4, 32], strides = [1, 1]} : vector<4x128xf32> to vector<4x32xf32>
    %302 = vector.extract_strided_slice %298 {offsets = [0, 32], sizes = [4, 32], strides = [1, 1]} : vector<4x128xf32> to vector<4x32xf32>
    %303 = vector.extract_strided_slice %298 {offsets = [0, 96], sizes = [4, 32], strides = [1, 1]} : vector<4x128xf32> to vector<4x32xf32>
    %304 = arith.mulf %302, %276 : vector<4x32xf32>
    %305 = arith.mulf %301, %300 : vector<4x32xf32>
    %306 = arith.addf %304, %305 : vector<4x32xf32>
    %307 = math.tanh %306 : vector<4x32xf32>
    %308 = arith.mulf %303, %307 : vector<4x32xf32>
    %c1_i32_38 = arith.constant 1 : i32
    %309 = vector.broadcast %c1_i32_38 : i32 to vector<4x1xi32>
    %310 = arith.subi %12, %309 : vector<4x1xi32>
    %c9_i32 = arith.constant 9 : i32
    %311 = vector.broadcast %c9_i32 : i32 to vector<4x1xi32>
    %312 = arith.cmpi eq, %310, %311 : vector<4x1xi32>
    %313 = vector.shape_cast %312 : vector<4x1xi1> to vector<4x1xi1>
    %314 = vector.broadcast %313 : vector<4x1xi1> to vector<4x32xi1>
    %315 = arith.select %314, %308, %285 : vector<4x32xi1>, vector<4x32xf32>
    %cst_39 = arith.constant dense<0.000000e+00> : vector<4x8xf32>
    %316 = tpu.matmul %315, %5, %cst_39 {dimension_numbers = #tpu.dot_dimension_numbers<[1], [0], [0], [1], [0, 0, 1, 1], [], []>} : vector<4x32xf32>, vector<32x8xf32>, vector<4x8xf32> -> vector<4x8xf32>
    %317 = vector.broadcast %6 : vector<1x8xf32> to vector<4x8xf32>
    %318 = arith.addf %316, %317 : vector<4x8xf32>
    %cst_40 = arith.constant dense<0xFF800000> : vector<4xf32>
    %319 = vector.multi_reduction <maximumf>, %318, %cst_40 [1] : vector<4x8xf32> to vector<4xf32>
    %320 = vector.shape_cast %319 : vector<4xf32> to vector<4x1xf32>
    %321 = vector.broadcast %320 : vector<4x1xf32> to vector<4x8xf32>
    %322 = arith.subf %318, %321 : vector<4x8xf32>
    %323 = math.exp %322 : vector<4x8xf32>
    %cst_41 = arith.constant dense<0.000000e+00> : vector<4xf32>
    %324 = vector.multi_reduction <add>, %323, %cst_41 [1] : vector<4x8xf32> to vector<4xf32>
    %325 = vector.shape_cast %324 : vector<4xf32> to vector<4x1xf32>
    %326 = math.log %325 : vector<4x1xf32>
    %327 = arith.addf %320, %326 : vector<4x1xf32>
    %328 = vector.broadcast %327 : vector<4x1xf32> to vector<4x8xf32>
    %329 = arith.subf %318, %328 : vector<4x8xf32>
    %c0_42 = arith.constant 0 : index
    %c0_43 = arith.constant 0 : index
    %330 = vector.load %arg3[%c0_42, %c0_43] : memref<4x8xf32, #tpu.memory_space<vmem>>, vector<4x8xf32>
    tpu.vector_store %arg3[%c0_42, %c0_43], %329 {strides = array<i32>} : memref<4x8xf32, #tpu.memory_space<vmem>>, vector<4x8xf32>,
    return
  }
}

</mosaic_0001>

<bundles_post_ra>
// kernel: tpu_custom_call.1
= control target key start
LH: loop header
LB: loop body
LE: loop exit
PB: predicated region body
PF: predicated region fallthrough
CT: control target
= control target key end

     0   :  { %v1657_v3 = vmov 0.0|0.0   ;;  %vm1658_vm0 = vmmov 0   ;;  %v1659_v6 = vmov 0.0   ;;  %v1660_v8 = vmov 0   ;;  %s1935_s0 = inlined_call_operand.vmem [shape: f32[4,10], index: 0, kind: input, shape index: {}]   ;;  %s1936_s1 = inlined_call_operand.vmem [shape: f32[34,128], index: 1, kind: input, shape index: {}]   ;;  %s1937_s2 = inlined_call_operand.vmem [shape: f32[33,8], index: 2, kind: input, shape index: {}]   ;;  %s1938_s3 = inlined_call_operand.hbm [shape: f32[4,8], index: 3, kind: output, shape index: {}]  }
   0x1   :  { %v15_v0 = vld [vmem:[%s1936_s1] sm:$0xff]  ;;  %v16_v1 = vld [vmem:[%s1936_s1 + $0x8] sm:$0xff]  ;;  %v17_v2 = vld [vmem:[%s1936_s1 + $0x10] sm:$0xff]  ;;  %1457 = vmatprep.subr.bf16.mxu0 %v1657_v3  ;;  %1344 = vmatprep.mubr.msk.f32.mxu0 %vm1658_vm0, %v1659_v6 }
   0x2   :  { %v1703_v4 = vpack.c.bf16 %v16_v1, %v15_v0  ;;  %v18_v5 = vld [vmem:[%s1936_s1 + $0x18] sm:$0xff]  ;;  %v1713_v7 = vld [vmem:[%s1935_s0] sm:$0xf]  ;;  %1539 = vset.pattern.permute.xlu0 %v1660_v8  ;;  %1463 = vmatprep.subr.bf16.mxu1 %v1657_v3 }
   0x3   :  { %8 = vsyncpa [#allocation3], 0  ;;  %v1718_v9 = vpack.c.bf16 %v18_v5, %v17_v2  ;;  %44 = vperm.xlu0 %1539, %v1713_v7   ;;  %1355 = vmatprep.mubr.msk.f32.mxu1 %vm1658_vm0, %v1659_v6  ;;  %v47_v10 = vlaneseq  ;;  %v19_v13 = vld [vmem:[%s1936_s1 + $0x20] sm:$0x3]  ;;  %s1661_s23 = smov 64   ;;  %s1662_s1 = smov 32  }
   0x4   :  { %1459 = vmatpush3.bf16.msra.mxu0 %v1703_v4  ;;  %1465 = vmatpush3.bf16.msra.mxu1 %v1703_v4  ;;  %v1663_v34 = vmov 1   ;;  %vm57_vm1 = vcmask 261120   ;;  %v1664_v55 = vmov 2   ;;  %vm26_vm2 = vcmp.ne.f32.partialorder %v1713_v7, 0.0 }
   0x5   :  { %1460 = vmatprep.subr.bf16.mxu0 %v1657_v3  ;;  %1466 = vmatprep.subr.bf16.mxu1 %v1657_v3  ;;  %v48_v11 = vshrl.u32 %v47_v10, 7  ;;  %vm28_vm3 = vcmask 76800   ;;  %vm1230_vm14 = vcmask 60416  }
   0x6   :  { %1540 = vset.pattern.permute.xlu1 %v1663_v34 }
   0x7   :  { %v49_v12 = vsub.s32 0, %v48_v11  ;;  %v54_v15 = vsub.s32 1, %v48_v11  ;;  %1541 = vset.pattern.permute.xlu0 %v1664_v55 }
   0x8   :  { %1462 = vmatpush3.bf16.msra.mxu0 %v1718_v9  ;;  %1468 = vmatpush3.bf16.msra.mxu1 %v1718_v9 }
   0x9   :  { %1469 = vmatprep.subr.bf16.mxu0 %v1657_v3  ;;  %1475 = vmatprep.subr.bf16.mxu1 %v1657_v3  ;;  %v1740_v14 = vrot.slane %v19_v13, %v49_v12  ;;  %v1743_v18 = vrot.slane %v19_v13, %v54_v15 }
   0xb   :  { %1345 = vmatmul.mubr.f32.vlgmr.msra.gmra.mrb[0].mxu0 %v1659_v6 }
   0xc   :  { %1471 = vmatpush3.bf16.msra.mxu0 %v1703_v4  ;;  %1366 = vmatprep.mubr.msk.f32.mxu0 %vm1658_vm0, %v1659_v6 }
   0xd   :  { %1472 = vmatprep.subr.bf16.mxu0 %v1657_v3 }
  0x10   :  { %1474 = vmatpush3.bf16.msra.mxu0 %v1718_v9 }
  0x11   :  { %1481 = vmatprep.subr.bf16.mxu0 %v1657_v3 }
  0x82   :  { %v45_v16 = vpop.permute.xlu0 %44 }
  0x83   :  { %v51_v17 = vmul.f32 %v1740_v14, %v45_v16 }
  0x85   :  { %v56_v19 = vadd.f32 %v1743_v18, %v51_v17 }
  0xde   :  { %v127_v20 = vpop.f32.mrb[0].mxu0 }
  0xdf   :  { %v131_v21 = vadd.f32 %v127_v20, %v56_v19  ;;  %v1346_v22 = vpop.f32.mrb[1].mxu0  ;;  %v1665_v20 = vmov 3  }
  0xe1   :  { %1549 = vtanh.f32 %v131_v21  ;;  %v1259_v24 = vmul.f32 -1.442695, %v131_v21 }
  0xe3   :  { %1551 = vpow2.f32 %v1259_v24 }
  0xeb   :  { %v1550_v23 = vpop.eup %1549 }
  0xec   :  { %141 = vrot.lane.b32.xlu0 %v1550_v23, %s1661_s23 }
  0xed   :  { %v1552_v25 = vpop.eup %1551 }
  0xee   :  { %v135_v26 = vadd.f32 1.0, %v1552_v25 }
  0xf0   :  { %1553 = vrcp.f32 %v135_v26 }
  0xfa   :  { %v1554_v27 = vpop.eup %1553 }
  0xfb   :  { %v139_v30 = vmul.f32 0.0, %v1554_v27 }
 0x15e   :  { %v142_v28 = vpop.permute.xlu0 %141 }
 0x15f   :  { %v144_v29 = vmul.f32 %v1554_v27, %v142_v28 }
 0x161   :  { %146 = vrot.lane.b32.xlu1 %v144_v29, %s1662_s1 }
 0x1d3   :  { %v147_v31 = vpop.permute.xlu1 %146 }
 0x1d4   :  { %v149_v32 = vadd.f32 %v147_v31, %v139_v30 }
 0x1d6   :  { %1555 = vtanh.f32 %v149_v32 }
 0x1e0   :  { %v1556_v33 = vpop.eup %1555 }
 0x1e1   :  { %152 = vrot.lane.b32.xlu1 %v1556_v33, %s1661_s23 }
 0x1e5   :  { %162 = vperm.xlu1 %1540, %v1713_v7  }
 0x253   :  { %v153_v35 = vpop.permute.xlu1 %152 }
 0x254   :  { %v1750_v36 = vmul.f32 %v1554_v27, %v153_v35 }
 0x256   :  { %168 = vrot.lane.b32.xlu0 %v1750_v36, %s1662_s1 }
 0x264   :  { %v163_v38 = vpop.permute.xlu1 %162 }
 0x265   :  { %v165_v39 = vmul.f32 %v163_v38, %v1740_v14 }
 0x267   :  { %v166_v40 = vadd.f32 %v165_v39, %v1743_v18 }
 0x2c8   :  { %v169_v37 = vpop.permute.xlu0 %168 }
 0x2c9   :  { %1356 = vmatmul.mubr.msk.f32.vlgmr.msra.gmra.mrb[0].mxu1 %vm57_vm1, %v169_v37 }
 0x2ca   :  { %1477 = vmatpush3.bf16.msra.mxu1 %v1703_v4  ;;  %1377 = vmatprep.mubr.msk.f32.mxu1 %vm1658_vm0, %v1659_v6 }
 0x2cb   :  { %1478 = vmatprep.subr.bf16.mxu1 %v1657_v3 }
 0x2ce   :  { %1480 = vmatpush3.bf16.msra.mxu1 %v1718_v9 }
 0x2cf   :  { %1487 = vmatprep.subr.bf16.mxu1 %v1657_v3 }
 0x39c   :  { %v238_v41 = vpop.f32.mrb[0].mxu1 }
 0x39d   :  { %v242_v42 = vadd.f32 %v238_v41, %v166_v40  ;;  %v1357_v43 = vpop.f32.mrb[1].mxu1 }
 0x39f   :  { %1557 = vtanh.f32 %v242_v42  ;;  %v1262_v45 = vmul.f32 -1.442695, %v242_v42  ;;  %v1666_v42 = vmov 4  }
 0x3a1   :  { %1559 = vpow2.f32 %v1262_v45 }
 0x3a9   :  { %v1558_v44 = vpop.eup %1557 }
 0x3aa   :  { %252 = vrot.lane.b32.xlu0 %v1558_v44, %s1661_s23 }
 0x3ab   :  { %v1560_v46 = vpop.eup %1559 }
 0x3ac   :  { %v246_v47 = vadd.f32 1.0, %v1560_v46 }
 0x3ae   :  { %1561 = vrcp.f32 %v246_v47 }
 0x3b8   :  { %v1562_v48 = vpop.eup %1561 }
 0x3b9   :  { %v250_v51 = vmul.f32 %v1562_v48, %v149_v32 }
 0x41c   :  { %v253_v49 = vpop.permute.xlu0 %252 }
 0x41d   :  { %v255_v50 = vmul.f32 %v1562_v48, %v253_v49 }
 0x41f   :  { %257 = vrot.lane.b32.xlu1 %v255_v50, %s1662_s1 }
 0x491   :  { %v258_v52 = vpop.permute.xlu1 %257 }
 0x492   :  { %v260_v53 = vadd.f32 %v258_v52, %v250_v51 }
 0x494   :  { %1563 = vtanh.f32 %v260_v53 }
 0x49e   :  { %v1564_v54 = vpop.eup %1563 }
 0x49f   :  { %263 = vrot.lane.b32.xlu0 %v1564_v54, %s1661_s23 }
 0x4a3   :  { %272 = vperm.xlu0 %1541, %v1713_v7  }
 0x4a7   :  { %1542 = vset.pattern.permute.xlu0 %v1665_v20 }
 0x511   :  { %v264_v56 = vpop.permute.xlu0 %263 }
 0x512   :  { %v1767_v57 = vmul.f32 %v1562_v48, %v264_v56 }
 0x514   :  { %278 = vrot.lane.b32.xlu1 %v1767_v57, %s1662_s1 }
 0x522   :  { %v273_v59 = vpop.permute.xlu0 %272 }
 0x523   :  { %v275_v60 = vmul.f32 %v273_v59, %v1740_v14 }
 0x525   :  { %v276_v61 = vadd.f32 %v275_v60, %v1743_v18 }
 0x586   :  { %v279_v58 = vpop.permute.xlu1 %278 }
 0x587   :  { %1367 = vmatmul.mubr.msk.f32.vlgmr.msra.gmra.mrb[2].mxu0 %vm57_vm1, %v279_v58 }
 0x588   :  { %1483 = vmatpush3.bf16.msra.mxu0 %v1703_v4  ;;  %1388 = vmatprep.mubr.msk.f32.mxu0 %vm1658_vm0, %v1659_v6 }
 0x589   :  { %1484 = vmatprep.subr.bf16.mxu0 %v1657_v3 }
 0x58c   :  { %1486 = vmatpush3.bf16.msra.mxu0 %v1718_v9 }
 0x58d   :  { %1493 = vmatprep.subr.bf16.mxu0 %v1657_v3 }
 0x65a   :  { %v348_v62 = vpop.f32.mrb[2].mxu0 }
 0x65b   :  { %v352_v63 = vadd.f32 %v348_v62, %v276_v61  ;;  %v1368_v0 = vpop.f32.mrb[3].mxu0 }
 0x65c   :  { %v1667_v0 = vmov 5  }
 0x65d   :  { %1565 = vtanh.f32 %v352_v63  ;;  %v1264_v2 = vmul.f32 -1.442695, %v352_v63 }
 0x65f   :  { %1567 = vpow2.f32 %v1264_v2 }
 0x667   :  { %v1566_v1 = vpop.eup %1565 }
 0x668   :  { %362 = vrot.lane.b32.xlu1 %v1566_v1, %s1661_s23 }
 0x669   :  { %v1568_v5 = vpop.eup %1567 }
 0x66a   :  { %v356_v10 = vadd.f32 1.0, %v1568_v5 }
 0x66c   :  { %1569 = vrcp.f32 %v356_v10 }
 0x676   :  { %v1570_v11 = vpop.eup %1569 }
 0x677   :  { %v360_v15 = vmul.f32 %v1570_v11, %v260_v53 }
 0x6da   :  { %v363_v12 = vpop.permute.xlu1 %362 }
 0x6db   :  { %v365_v13 = vmul.f32 %v1570_v11, %v363_v12 }
 0x6dd   :  { %367 = vrot.lane.b32.xlu1 %v365_v13, %s1662_s1 }
 0x74f   :  { %v368_v16 = vpop.permute.xlu1 %367 }
 0x750   :  { %v370_v17 = vadd.f32 %v368_v16, %v360_v15 }
 0x752   :  { %1571 = vtanh.f32 %v370_v17 }
 0x75c   :  { %v1572_v19 = vpop.eup %1571 }
 0x75d   :  { %373 = vrot.lane.b32.xlu0 %v1572_v19, %s1661_s23 }
 0x761   :  { %382 = vperm.xlu0 %1542, %v1713_v7  }
 0x765   :  { %1543 = vset.pattern.permute.xlu0 %v1666_v42 }
 0x7cf   :  { %v374_v21 = vpop.permute.xlu0 %373 }
 0x7d0   :  { %v1784_v22 = vmul.f32 %v1570_v11, %v374_v21 }
 0x7d2   :  { %388 = vrot.lane.b32.xlu1 %v1784_v22, %s1662_s1 }
 0x7e0   :  { %v383_v24 = vpop.permute.xlu0 %382 }
 0x7e1   :  { %v385_v25 = vmul.f32 %v383_v24, %v1740_v14 }
 0x7e3   :  { %v386_v26 = vadd.f32 %v385_v25, %v1743_v18 }
 0x844   :  { %v389_v23 = vpop.permute.xlu1 %388 }
 0x845   :  { %1378 = vmatmul.mubr.msk.f32.vlgmr.msra.gmra.mrb[2].mxu1 %vm57_vm1, %v389_v23 }
 0x846   :  { %1489 = vmatpush3.bf16.msra.mxu1 %v1703_v4  ;;  %1399 = vmatprep.mubr.msk.f32.mxu1 %vm1658_vm0, %v1659_v6 }
 0x847   :  { %1490 = vmatprep.subr.bf16.mxu1 %v1657_v3 }
 0x84a   :  { %1492 = vmatpush3.bf16.msra.mxu1 %v1718_v9 }
 0x84b   :  { %1499 = vmatprep.subr.bf16.mxu1 %v1657_v3 }
 0x918   :  { %v458_v27 = vpop.f32.mrb[2].mxu1 }
 0x919   :  { %v462_v28 = vadd.f32 %v458_v27, %v386_v26  ;;  %v1379_v29 = vpop.f32.mrb[3].mxu1 }
 0x91b   :  { %1573 = vtanh.f32 %v462_v28  ;;  %v1266_v31 = vmul.f32 -1.442695, %v462_v28 }
 0x91d   :  { %1575 = vpow2.f32 %v1266_v31 }
 0x925   :  { %v1574_v30 = vpop.eup %1573 }
 0x926   :  { %472 = vrot.lane.b32.xlu1 %v1574_v30, %s1661_s23  ;;  %v1668_v30 = vmov 6  }
 0x927   :  { %v1576_v32 = vpop.eup %1575 }
 0x928   :  { %v466_v33 = vadd.f32 1.0, %v1576_v32 }
 0x92a   :  { %1577 = vrcp.f32 %v466_v33 }
 0x934   :  { %v1578_v34 = vpop.eup %1577 }
 0x935   :  { %v470_v38 = vmul.f32 %v1578_v34, %v370_v17 }
 0x998   :  { %v473_v35 = vpop.permute.xlu1 %472 }
 0x999   :  { %v475_v37 = vmul.f32 %v1578_v34, %v473_v35 }
 0x99b   :  { %477 = vrot.lane.b32.xlu1 %v475_v37, %s1662_s1 }
 0xa0d   :  { %v478_v39 = vpop.permute.xlu1 %477 }
 0xa0e   :  { %v480_v40 = vadd.f32 %v478_v39, %v470_v38 }
 0xa10   :  { %1579 = vtanh.f32 %v480_v40 }
 0xa1a   :  { %v1580_v41 = vpop.eup %1579 }
 0xa1b   :  { %483 = vrot.lane.b32.xlu0 %v1580_v41, %s1661_s23 }
 0xa1f   :  { %492 = vperm.xlu0 %1543, %v1713_v7  }
 0xa23   :  { %1544 = vset.pattern.permute.xlu0 %v1667_v0 }
 0xa8d   :  { %v484_v43 = vpop.permute.xlu0 %483 }
 0xa8e   :  { %v1801_v44 = vmul.f32 %v1578_v34, %v484_v43 }
 0xa90   :  { %498 = vrot.lane.b32.xlu1 %v1801_v44, %s1662_s1 }
 0xa9e   :  { %v493_v46 = vpop.permute.xlu0 %492 }
 0xa9f   :  { %v495_v47 = vmul.f32 %v493_v46, %v1740_v14 }
 0xaa1   :  { %v496_v48 = vadd.f32 %v495_v47, %v1743_v18 }
 0xb02   :  { %v499_v45 = vpop.permute.xlu1 %498 }
 0xb03   :  { %1389 = vmatmul.mubr.msk.f32.vlgmr.msra.gmra.mrb[4].mxu0 %vm57_vm1, %v499_v45 }
 0xb04   :  { %1495 = vmatpush3.bf16.msra.mxu0 %v1703_v4  ;;  %1410 = vmatprep.mubr.msk.f32.mxu0 %vm1658_vm0, %v1659_v6 }
 0xb05   :  { %1496 = vmatprep.subr.bf16.mxu0 %v1657_v3 }
 0xb08   :  { %1498 = vmatpush3.bf16.msra.mxu0 %v1718_v9 }
 0xb09   :  { %1505 = vmatprep.subr.bf16.mxu0 %v1657_v3 }
 0xbd6   :  { %v568_v49 = vpop.f32.mrb[4].mxu0 }
 0xbd7   :  { %v572_v50 = vadd.f32 %v568_v49, %v496_v48  ;;  %v1390_v51 = vpop.f32.mrb[5].mxu0 }
 0xbd9   :  { %1581 = vtanh.f32 %v572_v50  ;;  %v1268_v53 = vmul.f32 -1.442695, %v572_v50 }
 0xbdb   :  { %1583 = vpow2.f32 %v1268_v53  ;;  %v1669_v53 = vmov 7  }
 0xbe3   :  { %v1582_v52 = vpop.eup %1581 }
 0xbe4   :  { %582 = vrot.lane.b32.xlu1 %v1582_v52, %s1661_s23 }
 0xbe5   :  { %v1584_v54 = vpop.eup %1583 }
 0xbe6   :  { %v576_v55 = vadd.f32 1.0, %v1584_v54 }
 0xbe8   :  { %1585 = vrcp.f32 %v576_v55 }
 0xbf2   :  { %v1586_v56 = vpop.eup %1585 }
 0xbf3   :  { %v580_v60 = vmul.f32 %v1586_v56, %v480_v40 }
 0xc56   :  { %v583_v58 = vpop.permute.xlu1 %582 }
 0xc57   :  { %v585_v59 = vmul.f32 %v1586_v56, %v583_v58 }
 0xc59   :  { %587 = vrot.lane.b32.xlu1 %v585_v59, %s1662_s1 }
 0xccb   :  { %v588_v61 = vpop.permute.xlu1 %587 }
 0xccc   :  { %v590_v62 = vadd.f32 %v588_v61, %v580_v60 }
 0xcce   :  { %1587 = vtanh.f32 %v590_v62 }
 0xcd8   :  { %v1588_v63 = vpop.eup %1587 }
 0xcd9   :  { %593 = vrot.lane.b32.xlu0 %v1588_v63, %s1661_s23 }
 0xcdd   :  { %602 = vperm.xlu0 %1544, %v1713_v7  }
 0xce1   :  { %1545 = vset.pattern.permute.xlu0 %v1668_v30 }
 0xd4b   :  { %v594_v1 = vpop.permute.xlu0 %593 }
 0xd4c   :  { %v1818_v2 = vmul.f32 %v1586_v56, %v594_v1 }
 0xd4e   :  { %608 = vrot.lane.b32.xlu1 %v1818_v2, %s1662_s1 }
 0xd5c   :  { %v603_v10 = vpop.permute.xlu0 %602 }
 0xd5d   :  { %v605_v11 = vmul.f32 %v603_v10, %v1740_v14 }
 0xd5f   :  { %v606_v12 = vadd.f32 %v605_v11, %v1743_v18 }
 0xdc0   :  { %v609_v5 = vpop.permute.xlu1 %608 }
 0xdc1   :  { %1400 = vmatmul.mubr.msk.f32.vlgmr.msra.gmra.mrb[4].mxu1 %vm57_vm1, %v609_v5 }
 0xdc2   :  { %1501 = vmatpush3.bf16.msra.mxu1 %v1703_v4  ;;  %1421 = vmatprep.mubr.msk.f32.mxu1 %vm1658_vm0, %v1659_v6 }
 0xdc3   :  { %1502 = vmatprep.subr.bf16.mxu1 %v1657_v3 }
 0xdc6   :  { %1504 = vmatpush3.bf16.msra.mxu1 %v1718_v9 }
 0xdc7   :  { %1511 = vmatprep.subr.bf16.mxu1 %v1657_v3 }
 0xe94   :  { %v678_v13 = vpop.f32.mrb[4].mxu1 }
 0xe95   :  { %v682_v15 = vadd.f32 %v678_v13, %v606_v12  ;;  %v1401_v16 = vpop.f32.mrb[5].mxu1 }
 0xe97   :  { %1589 = vtanh.f32 %v682_v15  ;;  %v1270_v19 = vmul.f32 -1.442695, %v682_v15 }
 0xe99   :  { %1591 = vpow2.f32 %v1270_v19 }
 0xea1   :  { %v1590_v17 = vpop.eup %1589 }
 0xea2   :  { %692 = vrot.lane.b32.xlu1 %v1590_v17, %s1661_s23  ;;  %v1670_v17 = vmov 8  }
 0xea3   :  { %v1592_v20 = vpop.eup %1591 }
 0xea4   :  { %v686_v21 = vadd.f32 1.0, %v1592_v20 }
 0xea6   :  { %1593 = vrcp.f32 %v686_v21 }
 0xeb0   :  { %v1594_v23 = vpop.eup %1593 }
 0xeb1   :  { %v690_v26 = vmul.f32 %v1594_v23, %v590_v62 }
 0xf14   :  { %v693_v24 = vpop.permute.xlu1 %692 }
 0xf15   :  { %v695_v25 = vmul.f32 %v1594_v23, %v693_v24 }
 0xf17   :  { %697 = vrot.lane.b32.xlu1 %v695_v25, %s1662_s1 }
 0xf89   :  { %v698_v27 = vpop.permute.xlu1 %697 }
 0xf8a   :  { %v700_v28 = vadd.f32 %v698_v27, %v690_v26 }
 0xf8c   :  { %1595 = vtanh.f32 %v700_v28 }
 0xf96   :  { %v1596_v29 = vpop.eup %1595 }
 0xf97   :  { %703 = vrot.lane.b32.xlu0 %v1596_v29, %s1661_s23 }
 0xf9b   :  { %712 = vperm.xlu0 %1545, %v1713_v7  }
 0xf9f   :  { %1546 = vset.pattern.permute.xlu0 %v1669_v53 }
0x1009   :  { %v704_v31 = vpop.permute.xlu0 %703 }
0x100a   :  { %v1835_v32 = vmul.f32 %v1594_v23, %v704_v31 }
0x100c   :  { %718 = vrot.lane.b32.xlu1 %v1835_v32, %s1662_s1 }
0x101a   :  { %v713_v34 = vpop.permute.xlu0 %712 }
0x101b   :  { %v715_v35 = vmul.f32 %v713_v34, %v1740_v14 }
0x101d   :  { %v716_v37 = vadd.f32 %v715_v35, %v1743_v18 }
0x107e   :  { %v719_v33 = vpop.permute.xlu1 %718 }
0x107f   :  { %1411 = vmatmul.mubr.msk.f32.vlgmr.msra.gmra.mrb[6].mxu0 %vm57_vm1, %v719_v33 }
0x1080   :  { %1507 = vmatpush3.bf16.msra.mxu0 %v1703_v4  ;;  %1432 = vmatprep.mubr.msk.f32.mxu0 %vm1658_vm0, %v1659_v6 }
0x1081   :  { %1508 = vmatprep.subr.bf16.mxu0 %v1657_v3 }
0x1084   :  { %1510 = vmatpush3.bf16.msra.mxu0 %v1718_v9 }
0x1085   :  { %1517 = vmatprep.subr.bf16.mxu0 %v1657_v3 }
0x1152   :  { %v788_v38 = vpop.f32.mrb[6].mxu0 }
0x1153   :  { %v792_v39 = vadd.f32 %v788_v38, %v716_v37  ;;  %v1412_v40 = vpop.f32.mrb[7].mxu0 }
0x1155   :  { %1597 = vtanh.f32 %v792_v39  ;;  %v1272_v42 = vmul.f32 -1.442695, %v792_v39 }
0x1157   :  { %1599 = vpow2.f32 %v1272_v42 }
0x115f   :  { %v1598_v41 = vpop.eup %1597 }
0x1160   :  { %802 = vrot.lane.b32.xlu1 %v1598_v41, %s1661_s23  ;;  %v1671_v41 = vmov 9  }
0x1161   :  { %v1600_v43 = vpop.eup %1599 }
0x1162   :  { %v796_v45 = vadd.f32 1.0, %v1600_v43 }
0x1164   :  { %1601 = vrcp.f32 %v796_v45 }
0x116e   :  { %v1602_v46 = vpop.eup %1601 }
0x116f   :  { %v800_v49 = vmul.f32 %v1602_v46, %v700_v28 }
0x11d2   :  { %v803_v47 = vpop.permute.xlu1 %802 }
0x11d3   :  { %v805_v48 = vmul.f32 %v1602_v46, %v803_v47 }
0x11d5   :  { %807 = vrot.lane.b32.xlu1 %v805_v48, %s1662_s1  ;;  %v27_v48 = vsel %vm26_vm2, 1, %v1660_v8 }
0x1247   :  { %v808_v50 = vpop.permute.xlu1 %807 }
0x1248   :  { %v810_v51 = vadd.f32 %v808_v50, %v800_v49  ;;  %v29_v50 = vsel %vm28_vm3, %v27_v48, 0 }
0x124a   :  { %1603 = vtanh.f32 %v810_v51 }
0x1254   :  { %v1604_v52 = vpop.eup %1603 }
0x1255   :  { %813 = vrot.lane.b32.xlu0 %v1604_v52, %s1661_s23 }
0x1259   :  { %822 = vperm.xlu0 %1546, %v1713_v7  }
0x125d   :  { %1547 = vset.pattern.permute.xlu0 %v1670_v17 }
0x12c7   :  { %v814_v54 = vpop.permute.xlu0 %813 }
0x12c8   :  { %v1852_v55 = vmul.f32 %v1602_v46, %v814_v54  ;;  %v31_v54 = vshrl.u32 %v29_v50, 16 }
0x12ca   :  { %828 = vrot.lane.b32.xlu1 %v1852_v55, %s1662_s1 }
0x12d8   :  { %v823_v58 = vpop.permute.xlu0 %822 }
0x12d9   :  { %v825_v59 = vmul.f32 %v823_v58, %v1740_v14 }
0x12db   :  { %v826_v60 = vadd.f32 %v825_v59, %v1743_v18 }
0x133c   :  { %v829_v56 = vpop.permute.xlu1 %828 }
0x133d   :  { %1422 = vmatmul.mubr.msk.f32.vlgmr.msra.gmra.mrb[6].mxu1 %vm57_vm1, %v829_v56  ;;  %v33_v56 = vcvt.s32.f32 %v31_v54 }
0x133e   :  { %1513 = vmatpush3.bf16.msra.mxu1 %v1703_v4  ;;  %1443 = vmatprep.mubr.msk.f32.mxu1 %vm1658_vm0, %v1659_v6 }
0x133f   :  { %1514 = vmatprep.subr.bf16.mxu1 %v1657_v3 }
0x1342   :  { %1516 = vmatpush3.bf16.msra.mxu1 %v1718_v9 }
0x1410   :  { %v898_v61 = vpop.f32.mrb[6].mxu1 }
0x1411   :  { %v902_v62 = vadd.f32 %v898_v61, %v826_v60  ;;  %v1423_v63 = vpop.f32.mrb[7].mxu1 }
0x1413   :  { %1605 = vtanh.f32 %v902_v62  ;;  %v1274_v4 = vmul.f32 -1.442695, %v902_v62 }
0x1415   :  { %1607 = vpow2.f32 %v1274_v4 }
0x141d   :  { %v1606_v0 = vpop.eup %1605 }
0x141e   :  { %912 = vrot.lane.b32.xlu1 %v1606_v0, %s1661_s23 }
0x141f   :  { %v1608_v1 = vpop.eup %1607 }
0x1420   :  { %v906_v5 = vadd.f32 1.0, %v1608_v1  ;;  %v20_v1 = vld [vmem:[%s1937_s2] sm:$0xff] }
0x1422   :  { %1609 = vrcp.f32 %v906_v5  ;;  %v21_v5 = vld [vmem:[%s1937_s2 + $0x8] sm:$0xff] }
0x142c   :  { %v1610_v10 = vpop.eup %1609 }
0x142d   :  { %v910_v12 = vmul.f32 %v1610_v10, %v810_v51 }
0x1490   :  { %v913_v11 = vpop.permute.xlu1 %912 }
0x1491   :  { %v915_v9 = vmul.f32 %v1610_v10, %v913_v11  ;;  %v1518_v11 = vpack.c.bf16 %v21_v5, %v20_v1 }
0x1493   :  { %917 = vrot.lane.b32.xlu1 %v915_v9, %s1662_s1  ;;  %v23_v9 = vld [vmem:[%s1937_s2 + $0x18] sm:$0xff] }
0x1505   :  { %v918_v13 = vpop.permute.xlu1 %917 }
0x1506   :  { %v920_v15 = vadd.f32 %v918_v13, %v910_v12 }
0x1508   :  { %1611 = vtanh.f32 %v920_v15 }
0x1512   :  { %v1612_v16 = vpop.eup %1611 }
0x1513   :  { %923 = vrot.lane.b32.xlu0 %v1612_v16, %s1661_s23 }
0x1517   :  { %932 = vperm.xlu0 %1547, %v1713_v7  }
0x151b   :  { %1548 = vset.pattern.permute.xlu0 %v1671_v41 }
0x1585   :  { %v924_v19 = vpop.permute.xlu0 %923 }
0x1586   :  { %v1868_v20 = vmul.f32 %v1610_v10, %v924_v19  ;;  %v22_v10 = vld [vmem:[%s1937_s2 + $0x10] sm:$0xff] }
0x1587   :  { %v1521_v12 = vpack.c.bf16 %v23_v9, %v22_v10 }
0x1588   :  { %938 = vrot.lane.b32.xlu1 %v1868_v20, %s1662_s1 }
0x1596   :  { %v933_v23 = vpop.permute.xlu0 %932 }
0x1597   :  { %v935_v24 = vmul.f32 %v933_v23, %v1740_v14 }
0x1599   :  { %v936_v25 = vadd.f32 %v935_v24, %v1743_v18 }
0x15fa   :  { %v939_v21 = vpop.permute.xlu1 %938 }
0x15fb   :  { %1433 = vmatmul.mubr.msk.f32.vlgmr.msra.gmra.mrb[8].mxu0 %vm57_vm1, %v939_v21 }
0x15fc   :  { %1454 = vmatprep.mubr.msk.f32.mxu0 %vm1658_vm0, %v1659_v6  ;;  %1519 = vmatpush3.bf16.msra.mxu0 %v1518_v11 }
0x15fd   :  { %1520 = vmatprep.subr.bf16.mxu0 %v1657_v3 }
0x1600   :  { %1522 = vmatpush3.bf16.msra.mxu0 %v1521_v12 }
0x16ce   :  { %v1008_v26 = vpop.f32.mrb[8].mxu0 }
0x16cf   :  { %v1012_v27 = vadd.f32 %v1008_v26, %v936_v25  ;;  %v1434_v28 = vpop.f32.mrb[9].mxu0 }
0x16d1   :  { %1613 = vtanh.f32 %v1012_v27  ;;  %v1276_v30 = vmul.f32 -1.442695, %v1012_v27 }
0x16d3   :  { %1615 = vpow2.f32 %v1276_v30 }
0x16db   :  { %v1614_v29 = vpop.eup %1613 }
0x16dc   :  { %1022 = vrot.lane.b32.xlu1 %v1614_v29, %s1661_s23 }
0x16dd   :  { %v1616_v31 = vpop.eup %1615 }
0x16de   :  { %v1016_v33 = vadd.f32 1.0, %v1616_v31 }
0x16e0   :  { %1617 = vrcp.f32 %v1016_v33 }
0x16ea   :  { %v1618_v34 = vpop.eup %1617 }
0x16eb   :  { %v1020_v37 = vmul.f32 %v1618_v34, %v920_v15 }
0x174e   :  { %v1023_v35 = vpop.permute.xlu1 %1022 }
0x174f   :  { %v1025_v6 = vmul.f32 %v1618_v34, %v1023_v35 }
0x1751   :  { %1027 = vrot.lane.b32.xlu1 %v1025_v6, %s1662_s1 }
0x17c3   :  { %v1028_v38 = vpop.permute.xlu1 %1027 }
0x17c4   :  { %v1030_v39 = vadd.f32 %v1028_v38, %v1020_v37 }
0x17c6   :  { %1619 = vtanh.f32 %v1030_v39 }
0x17d0   :  { %v1620_v40 = vpop.eup %1619 }
0x17d1   :  { %1033 = vrot.lane.b32.xlu0 %v1620_v40, %s1661_s23 }
0x17d5   :  { %1042 = vperm.xlu0 %1548, %v1713_v7  }
0x17f4   :  { %36 = vadd.xlane.f32.xlu0 %v33_v56 }
0x1843   :  { %v1034_v42 = vpop.permute.xlu0 %1033 }
0x1844   :  { %v1881_v43 = vmul.f32 %v1618_v34, %v1034_v42 }
0x1846   :  { %1048 = vrot.lane.b32.xlu1 %v1881_v43, %s1662_s1 }
0x1854   :  { %v1043_v46 = vpop.permute.xlu0 %1042 }
0x1855   :  { %v1045_v47 = vmul.f32 %v1043_v46, %v1740_v14 }
0x1857   :  { %v1046_v49 = vadd.f32 %v1045_v47, %v1743_v18  ;;  %v30_v18 = vand.u32 65535, %v29_v50 }
0x1859   :  { %v32_v62 = vcvt.s32.f32 %v30_v18 }
0x1881   :  { %v37_v15 = vpop.xlane.xlu0 %36 }
0x1882   :  { %v39_v16 = vcvt.f32.s32 %v37_v15 }
0x1884   :  { %v40_v19 = vshll.u32 %v39_v16, 16 }
0x18b8   :  { %v1049_v45 = vpop.permute.xlu1 %1048 }
0x18b9   :  { %1444 = vmatmul.mubr.msk.f32.vlgmr.msra.gmra.mrb[8].mxu1 %vm57_vm1, %v1049_v45 }
0x198c   :  { %v1118_v51 = vpop.f32.mrb[8].mxu1 }
0x198d   :  { %v1122_v52 = vadd.f32 %v1118_v51, %v1046_v49  ;;  %v1445_v53 = vpop.f32.mrb[9].mxu1 }
0x198f   :  { %1621 = vtanh.f32 %v1122_v52  ;;  %v1278_v59 = vmul.f32 -1.442695, %v1122_v52 }
0x1991   :  { %1623 = vpow2.f32 %v1278_v59 }
0x1999   :  { %v1622_v58 = vpop.eup %1621 }
0x199a   :  { %1132 = vrot.lane.b32.xlu1 %v1622_v58, %s1661_s23 }
0x199b   :  { %v1624_v14 = vpop.eup %1623 }
0x199c   :  { %v1126_v7 = vadd.f32 1.0, %v1624_v14 }
0x199e   :  { %1625 = vrcp.f32 %v1126_v7 }
0x19a8   :  { %v1626_v60 = vpop.eup %1625 }
0x19a9   :  { %v1130_v63 = vmul.f32 %v1626_v60, %v1030_v39 }
0x1a0c   :  { %v1133_v8 = vpop.permute.xlu1 %1132 }
0x1a0d   :  { %v1135_v61 = vmul.f32 %v1626_v60, %v1133_v8 }
0x1a0f   :  { %1137 = vrot.lane.b32.xlu1 %v1135_v61, %s1662_s1 }
0x1a33   :  { %34 = vadd.xlane.f32.xlu1 %v32_v62 }
0x1a81   :  { %v1138_v0 = vpop.permute.xlu1 %1137 }
0x1a82   :  { %v1140_v4 = vadd.f32 %v1138_v0, %v1130_v63 }
0x1a84   :  { %1627 = vtanh.f32 %v1140_v4 }
0x1a8e   :  { %v1628_v13 = vpop.eup %1627 }
0x1a8f   :  { %1143 = vrot.lane.b32.xlu0 %v1628_v13, %s1661_s23 }
0x1ac0   :  { %v35_v17 = vpop.xlane.xlu1 %34 }
0x1ac1   :  { %v38_v21 = vcvt.f32.s32 %v35_v17 }
0x1ac3   :  { %v41_v23 = vadd.s32 %v40_v19, %v38_v21 }
0x1ac5   :  { %v1260_v24 = vadd.s32 4294967295, %v41_v23 }
0x1ac7   :  { %vm157_vm4 = vcmp.eq.s32.totalorder %v1260_v24, 0  ;;  %vm267_vm5 = vcmp.eq.s32.totalorder %v1260_v24, 1  ;;  %vm377_vm6 = vcmp.eq.s32.totalorder %v1260_v24, 2  ;;  %vm487_vm7 = vcmp.eq.s32.totalorder %v1260_v24, 3 }
0x1ac8   :  { %v160_v25 = vsel %vm157_vm4, %v1750_v36, 0.0  ;;  %vm597_vm8 = vcmp.eq.s32.totalorder %v1260_v24, 4  ;;  %vm707_vm9 = vcmp.eq.s32.totalorder %v1260_v24, 5  ;;  %vm817_vm10 = vcmp.eq.s32.totalorder %v1260_v24, 6 }
0x1ac9   :  { %v270_v26 = vsel %vm267_vm5, %v1767_v57, %v160_v25  ;;  %vm927_vm11 = vcmp.eq.s32.totalorder %v1260_v24, 7  ;;  %vm1037_vm12 = vcmp.eq.s32.totalorder %v1260_v24, 8  ;;  %vm1147_vm13 = vcmp.eq.s32.totalorder %v1260_v24, 9 }
0x1aca   :  { %v380_v3 = vsel %vm377_vm6, %v1784_v22, %v270_v26 }
0x1acb   :  { %v490_v27 = vsel %vm487_vm7, %v1801_v44, %v380_v3 }
0x1acc   :  { %v600_v28 = vsel %vm597_vm8, %v1818_v2, %v490_v27  ;;  %v1279_v2 = vld [vmem:[%s1937_s2 + $0x20] ss:$0 sm:$0xff]  ;;  %s1672_s2 = smov [#allocation2]  }
0x1acd   :  { %v710_v29 = vsel %vm707_vm9, %v1835_v32, %v600_v28  ;;  %s1251_s7 = sshll.u32 %s1672_s2, 4  ;;  %s1252_s7 = int_to_ptr.vmem [resolvable:$true] %s1251_s7 }
0x1ace   :  { %v820_v30 = vsel %vm817_vm10, %v1852_v55, %v710_v29  ;;  %s1633_s8 = scalar_lea.vmem %s1252_s7, 64  ;;  %p1638_p1 = scmp.lt.s32.totalorder %s1252_s7, %s1252_s7 }
0x1acf   :  { %v930_v36 = vsel %vm927_vm11, %v1868_v20, %v820_v30  ;;  %p1634_p0 = scmp.ne.s32.totalorder %s1252_s7, %s1633_s8  ;;  %p1639_p2 = scmp.lt.s32.totalorder %s1633_s8, %s1633_s8 }
0x1ad0   :  { %v1040_v22 = vsel %vm1037_vm12, %v1881_v43, %v930_v36 }
0x1ad1   :  { %p1640_p3 = por %p1639_p2, %p1638_p1 }
0x1ad3   :  { %p1641_p4 = pnand %p1640_p3, %p1634_p0 }
0x1b01   :  { %v1144_v57 = vpop.permute.xlu0 %1143 }
0x1b02   :  { %v1146_v31 = vmul.f32 %v1626_v60, %v1144_v57 }
0x1b04   :  { %v1150_v33 = vsel %vm1147_vm13, %v1146_v31, %v1040_v22 }
0x1b05   :  { %1156 = vrot.lane.b32.xlu1 %v1150_v33, %s1662_s1 }
0x1b77   :  { %v1157_v44 = vpop.permute.xlu1 %1156 }
0x1b78   :  { %1455 = vmatmul.mubr.msk.f32.vlgmr.msra.gmra.mrb[10].mxu0 %vm57_vm1, %v1157_v44 }
0x1c4b   :  { %v1226_v32 = vpop.f32.mrb[10].mxu0 }
0x1c4c   :  { %v1227_v55 = vadd.f32 %v1279_v2, %v1226_v32  ;;  %v1456_v20 = vpop.f32.mrb[11].mxu0 }
0x1c4e   :  { %v1231_v34 = vsel %vm1230_vm14, %v1227_v55, -inf }
0x1c4f   :  { %1232 = vmax.xlane.f32.xlu0 %v1231_v34 }
0x1cdc   :  { %v1233_v35 = vpop.xlane.xlu0 %1232 }
0x1cdd   :  { %v1234_v6 = vsub.f32 %v1227_v55, %v1233_v35 }
0x1cdf   :  { %v1235_v37 = vmul.f32 1.442695, %v1234_v6 }
0x1ce1   :  { %1629 = vpow2.f32 %v1235_v37 }
0x1ceb   :  { %v1630_v38 = vpop.eup %1629 }
0x1cec   :  { %v1237_v39 = vsel %vm1230_vm14, %v1630_v38, 0.0 }
0x1ced   :  { %1238 = vadd.xlane.f32.xlu1 %v1237_v39 }
0x1d7a   :  { %v1239_v40 = vpop.xlane.xlu1 %1238 }
0x1d7b   :  { %1631 = vlog2.f32 %v1239_v40 }
0x1d85   :  { %v1632_v41 = vpop.eup %1631 }
0x1d86   :  { %v1241_v42 = vmul.f32 0.6931472, %v1632_v41 }
0x1d88   :  { %v1242_v43 = vadd.f32 %v1241_v42, %v1233_v35 }
0x1d8a   :  { %v1243_v45 = vsub.f32 %v1227_v55, %v1242_v43 }
0x1d8c   :  { %1244 = vst.msk [vmem:[#allocation2] sm:$0xf] %vm1230_vm14, %v1243_v45 }
0x1d8d   :  { %1644 = shalt.err (!%p1641_p4)
}
0x1d8e   :  { %s1645_s11 = scalar_lea.hbm %s1938_s3, 64 }
0x1d8f   :  { %p1646_p5 = scmp.ne.s32.totalorder %s1938_s3, %s1645_s11  ;;  %p1649_p6 = scmp.lt.u32.totalorder %s1645_s11, %s1938_s3 }
0x1d91   :  { %p1651_p7 = pnand %p1649_p6, %p1646_p5 }
0x1d93   :  { %1654 = shalt.err (!%p1651_p7)
}
0x1d94   :  { %1254 = dma.vmem_to_hbm [thread:$0]  %s1252_s7, 64, %s1938_s3, [#allocation3]  }
0x1d95   :  { %1655 = dma.done.wait [#allocation3], 64  }
0x1d96   :  { %1656 = vsyncadd [#allocation3], 4294967232 }
0x1d97   :  { %1258 = vsyncpa [#allocation3], 1 }

</bundles_post_ra>
